<compile_context>
chip_gen: v6e
topology: v6e:2x2x1
jax: 0.10.0
libtpu: 0.0.40
codegen_flags: <defaults>
</compile_context>

<pallas_src>
import jax
import jax.numpy as jnp
from jax.experimental import pallas as pl
from jax.experimental.pallas import tpu as pltpu


_LANE_CANDIDATES = (32768, 16384, 8192, 4096, 2048, 1024, 512, 256, 128)
_TARGET_BLOCK_BYTES = 4 << 20   # ~4 MiB per block per operand
_MAX_BLOCK_BYTES = 6 << 20      # cap so 4x block (in+out, double-buffered) fits VMEM
_VMEM_LIMIT_BYTES = 32 << 20    # raise v5e's 16 MiB default; matches v6e/v7x default

_SUBBYTE_DTYPES = frozenset({"int4", "uint4", "int2", "uint2", "float4_e2m1fn"})


def _double_kernel(a_ref, o_ref):
    # Elementwise hot path: out = a * 2 on the VPU (dtype preserved via weak typing).
    o_ref[...] = a_ref[...] * 2


def _min_sublanes(dtype) -> int:
    # Minimum sublane tile: 8 for 32-bit, 16 for bf16/f16, 32 for int8/fp8,
    # 64 for sub-byte packed dtypes.
    dt = jnp.dtype(dtype)
    if dt.name in _SUBBYTE_DTYPES:
        return 64
    return max(8, 32 // dt.itemsize)


def _choose_block_rows(R: int, C: int, itemsize: int, sub_min: int) -> int:
    """~4 MiB row-blocks, rounded to the dtype sublane multiple, and adjusted so
    the grid is >= 2 and even whenever there is enough work (lets the "parallel"
    grid axis shard across both TensorCores on v7x)."""
    target_rows = max(sub_min, _TARGET_BLOCK_BYTES // (C * itemsize))
    block_rows = (target_rows // sub_min) * sub_min
    block_rows = min(R, max(sub_min, block_rows)) if R >= sub_min else R
    if R >= 2 * sub_min:
        grid = pl.cdiv(R, block_rows)
        if grid < 2 or grid % 2 == 1:
            target_grid = max(2, grid + (grid % 2))
            rows = pl.cdiv(R, target_grid)
            rows = ((rows + sub_min - 1) // sub_min) * sub_min
            block_rows = min(R, max(sub_min, rows))
    return block_rows


def _double_pallas_2d(x2d: jax.Array) -> jax.Array:
    """Elementwise *2 over a 2D slab (R x C); last block dim is the full C so
    shapes whose last dim is not a multiple of 128 are still legal, and the
    ragged final row-block is masked by Pallas."""
    R, C = x2d.shape
    dt = jnp.dtype(x2d.dtype)
    sub_min = _min_sublanes(dt)
    block_rows = _choose_block_rows(R, C, dt.itemsize, sub_min)
    grid = pl.cdiv(R, block_rows)

    return pl.pallas_call(
        _double_kernel,
        out_shape=jax.ShapeDtypeStruct((R, C), x2d.dtype),
        grid_spec=pltpu.PrefetchScalarGridSpec(
            num_scalar_prefetch=0,
            grid=(grid,),
            in_specs=[pl.BlockSpec((block_rows, C), lambda i: (i, 0))],
            out_specs=pl.BlockSpec((block_rows, C), lambda i: (i, 0)),
        ),
        compiler_params=pltpu.CompilerParams(
            dimension_semantics=("parallel",),
            vmem_limit_bytes=_VMEM_LIMIT_BYTES,
        ),
        cost_estimate=pl.CostEstimate(
            flops=R * C,
            transcendentals=0,
            bytes_accessed=2 * R * C * dt.itemsize,
        ),
    )(x2d)


@jax.jit
def _double(a: jax.Array) -> jax.Array:
    """a * 2 with the hot path in a Pallas kernel (shape/dtype agnostic)."""
    n = a.size
    if n == 0:
        return a * 2
    dt = jnp.dtype(a.dtype)
    sub_min = _min_sublanes(dt)

    # Main path: widest lane width (multiple of 128) that exactly tiles the
    # flat array -> zero-copy reshape on both sides, unmasked full-width
    # stores, long contiguous DMA rows.
    lane = next((c for c in _LANE_CANDIDATES if n % (c * sub_min) == 0), None)
    if lane is not None:
        out2d = _double_pallas_2d(a.reshape(n // lane, lane))
        return out2d.reshape(a.shape)

    # Fallback for shapes that don't tile exactly: collapse to 2D (leading
    # dims, full last dim) and run the kernel in ONE pass — Pallas masks the
    # ragged final row-block, so no padding / concatenate / extra HBM pass.
    if a.ndim >= 2:
        C = a.shape[-1]
        R = n // C
        block_rows = _choose_block_rows(R, C, dt.itemsize, sub_min)
        if block_rows * C * dt.itemsize <= _MAX_BLOCK_BYTES:
            out2d = _double_pallas_2d(a.reshape(R, C))
            return out2d.reshape(a.shape)

    # Degenerate shapes (0-/1-D with awkward sizes, or a single row too wide
    # for VMEM): a plain multiply is already a single roofline HBM pass.
    return a * 2


def model_forward(inputs):
    """Mirror of Model.forward: dict in, dict out."""
    a = inputs["a"]
    assert isinstance(a, jax.Array)
    assert isinstance(inputs["b"], str)
    assert isinstance(inputs["c"], list) and all(
        isinstance(s, str) for s in inputs["c"]
    )

    # TODO(synk): string / list-of-string outputs have no tensor representation
    # on TPU; they are returned as plain Python objects, matching semantics.
    return {
        "doubled": _double(a),
        "string": "A string",
        "stringlist": ["A", "list", "of", "strings"],
    }


if __name__ == "__main__":
    key = jax.random.PRNGKey(0)
    a = jax.random.normal(key, (2, 4, 16, 16), dtype=jnp.float32)

    inputs = {"a": a, "b": "some string", "c": ["a", "list"]}
    out = model_forward(inputs)
    jax.block_until_ready(out["doubled"])

    # Correctness check against the trivial reference.
    assert out["doubled"].shape == a.shape
    assert out["doubled"].dtype == a.dtype
    assert jnp.allclose(out["doubled"], a * 2)
    assert out["string"] == "A string"
    assert out["stringlist"] == ["A", "list", "of", "strings"]

    # Extra coverage:
    #  - larger tensor exercising the wide-lane multi-block (grid=2) main path,
    #  - ragged 2D shape exercising the single-pass masked-last-block fallback,
    #  - awkward 1D shape exercising the plain-multiply degenerate path.
    k1, k2, k3 = jax.random.split(key, 3)
    big = jax.random.normal(k1, (64, 64, 128), dtype=jnp.float32)
    assert jnp.allclose(_double(big), big * 2)
    ragged = jax.random.normal(k2, (1000, 130), dtype=jnp.float32)
    assert jnp.allclose(_double(ragged), ragged * 2)
    odd1d = jax.random.normal(k3, (1003,), dtype=jnp.float32)
    assert jnp.allclose(_double(odd1d), odd1d * 2)

    print("KERNEL_OK")
</pallas_src>

<mosaic_0001>
module attributes {stable_mosaic.version = 11 : i64} {
  func.func @_double_kernel(%arg0: i32, %arg1: memref<8x256xf32, #tpu.memory_space<vmem>>, %arg2: memref<8x256xf32, #tpu.memory_space<vmem>>) attributes {dimension_semantics = [#tpu.dimension_semantics<parallel>], iteration_bounds = array<i64: 1>, scalar_prefetch = 0 : i64, scratch_operands = 0 : i64, tpu.core_type = #tpu.core_type<tc>, window_params = [{transform_indices = @transform_0, window_bounds = array<i64: 8, 256>}, {transform_indices = @transform_1, window_bounds = array<i64: 8, 256>}]} {
    %c0 = arith.constant 0 : index
    %c0_0 = arith.constant 0 : index
    %0 = vector.load %arg1[%c0, %c0_0] : memref<8x256xf32, #tpu.memory_space<vmem>>, vector<8x256xf32>
    %cst = arith.constant 2.000000e+00 : f32
    %1 = vector.broadcast %cst : f32 to vector<8x256xf32>
    %2 = arith.mulf %0, %1 : vector<8x256xf32>
    %c0_1 = arith.constant 0 : index
    %c0_2 = arith.constant 0 : index
    %3 = vector.load %arg2[%c0_1, %c0_2] : memref<8x256xf32, #tpu.memory_space<vmem>>, vector<8x256xf32>
    tpu.vector_store %arg2[%c0_1, %c0_2], %2 {strides = array<i32>} : memref<8x256xf32, #tpu.memory_space<vmem>>, vector<8x256xf32>,
    return
  }
  func.func @transform_0(%arg0: i32) -> (i32, i32) {
    %c0_i32 = arith.constant 0 : i32
    %c0_i32_0 = arith.constant 0 : i32
    return %arg0, %c0_i32 : i32, i32
  }
  func.func @transform_1(%arg0: i32) -> (i32, i32) {
    %c0_i32 = arith.constant 0 : i32
    %c0_i32_0 = arith.constant 0 : i32
    return %arg0, %c0_i32 : i32, i32
  }
}

</mosaic_0001>

<bundles_post_ra>
// kernel: _double.1
= control target key start
LH: loop header
LB: loop body
LE: loop exit
PB: predicated region body
PF: predicated region fallthrough
CT: control target
= control target key end

     0   :  { %s40_s0 = inlined_call_operand.vmem [shape: f32[8,256], index: 0, kind: input, shape index: {}]   ;;  %s41_s1 = inlined_call_operand.vmem [shape: f32[8,256], index: 1, kind: output, shape index: {}]  }
   0x1   :  { %v8_v0 = vld [vmem:[%s40_s0] sm:$0xff]  ;;  %v9_v1 = vld [vmem:[%s40_s0 + $0x8] sm:$0xff] }
   0x2   :  { %v10_v2 = vmul.f32 2.0, %v8_v0  ;;  %v11_v3 = vmul.f32 2.0, %v9_v1 }
   0x4   :  { %12 = vst [vmem:[%s41_s1] sm:$0xff] %v10_v2  ;;  %13 = vst [vmem:[%s41_s1 + $0x8] sm:$0xff] %v11_v3 }

</bundles_post_ra>
